<compile_context>
chip_gen: v7x
topology: tpu7x:2x2x1
jax: 0.10.0
libtpu: 0.0.40
codegen_flags: <defaults>
</compile_context>

<pallas_src>
import functools
import numpy as np
import jax
import jax.numpy as jnp
from jax.experimental import pallas as pl
from jax.experimental.pallas import tpu as pltpu


def _round_up(x, m):
    return (x + m - 1) // m * m


_VMEM_LIMIT = None


def _vmem_limit():
    """~3/4 of per-core VMEM (96 MiB on v5e/v6e, 48 MiB on v7x)."""
    global _VMEM_LIMIT
    if _VMEM_LIMIT is None:
        try:
            cap = int(pltpu.get_tpu_info().vmem_capacity_bytes)
        except Exception:
            cap = 64 * 1024 * 1024
        _VMEM_LIMIT = (cap // 4) * 3
    return _VMEM_LIMIT


def _cparams(dims=None):
    return pltpu.CompilerParams(dimension_semantics=dims,
                                vmem_limit_bytes=_vmem_limit())


# ----------------------------------------------------------------------------
# Fused stride-1 conv kernel: in-kernel KHxKW taps (no HBM im2col), bf16 MXU,
# f32 VMEM accumulator, fused BN-affine / residual / ReLU epilogue, bf16 out.
# ----------------------------------------------------------------------------

def _conv_s1_kernel(*refs, kh, kw, dil, n_ht, w8, act, has_res):
    if has_res:
        x_ref, w_ref, s_ref, b_ref, r_ref, o_ref, acc_ref = refs
    else:
        x_ref, w_ref, s_ref, b_ref, o_ref, acc_ref = refs
        r_ref = None
    N, THo, Wo, TN = o_ref.shape
    Cin = x_ref.shape[-1]
    M = N * THo * w8  # w8 = round_up(Wo, 8) keeps reshapes sublane-aligned

    for i in range(kh):
        for j in range(kw):
            if n_ht == 1:
                win = x_ref[:, i * dil:i * dil + THo,
                            j * dil:j * dil + w8, :]
            else:
                h0 = pl.program_id(0) * THo + i * dil
                win = x_ref[:, pl.ds(h0, THo), j * dil:j * dil + w8, :]
            part = jnp.dot(win.reshape(M, Cin), w_ref[i * kw + j],
                           preferred_element_type=jnp.float32)
            if i == 0 and j == 0:
                acc_ref[...] = part
            else:
                acc_ref[...] += part

    y = acc_ref[...].reshape(N, THo, w8, TN)[:, :, :Wo, :]
    y = y * s_ref[...] + b_ref[...]                 # (1, TN) broadcast
    if has_res:
        y = y + r_ref[...].astype(jnp.float32)      # bf16 residual stream
    if act == "relu":
        y = jnp.maximum(y, 0.0)
    o_ref[...] = y.astype(o_ref.dtype)


@functools.partial(jax.jit, static_argnames=("kh", "kw", "dil", "pad", "act"))
def conv_s1(x, w, scale, bias, residual=None, *, kh, kw, dil=1, pad=0,
            act="none"):
    """Stride-1 NHWC conv; w is (KH*KW, Cin, Cout) bf16."""
    N, H, W, Cin = x.shape
    Cout = w.shape[-1]
    Ho = H + 2 * pad - dil * (kh - 1)
    Wo = W + 2 * pad - dil * (kw - 1)
    w8 = _round_up(Wo, 8)

    xb = x.astype(jnp.bfloat16)
    extra_w = w8 - Wo
    if pad or extra_w:
        xb = jnp.pad(xb, ((0, 0), (pad, pad), (pad, pad + extra_w), (0, 0)))
    Hp, Wp = xb.shape[1], xb.shape[2]

    TN = 128 if Cout % 128 == 0 else Cout
    n_ct = Cout // TN
    THo = Ho
    if N * Ho * w8 > 1024:
        for t in range(Ho, 0, -1):
            if Ho % t == 0 and N * t * w8 <= 1024:
                THo = t
                break
    n_ht = Ho // THo
    has_res = residual is not None

    in_specs = [
        pl.BlockSpec((N, Hp, Wp, Cin), lambda h, c: (0, 0, 0, 0)),
        pl.BlockSpec((kh * kw, Cin, TN), lambda h, c: (0, 0, c)),
        pl.BlockSpec((1, TN), lambda h, c: (0, c)),
        pl.BlockSpec((1, TN), lambda h, c: (0, c)),
    ]
    operands = [xb, w, scale, bias]
    if has_res:
        in_specs.append(pl.BlockSpec((N, THo, Wo, TN),
                                     lambda h, c: (0, h, 0, c)))
        operands.append(residual.astype(jnp.bfloat16))

    return pl.pallas_call(
        functools.partial(_conv_s1_kernel, kh=kh, kw=kw, dil=dil, n_ht=n_ht,
                          w8=w8, act=act, has_res=has_res),
        out_shape=jax.ShapeDtypeStruct((N, Ho, Wo, Cout), jnp.bfloat16),
        grid=(n_ht, n_ct),
        in_specs=in_specs,
        out_specs=pl.BlockSpec((N, THo, Wo, TN), lambda h, c: (0, h, 0, c)),
        scratch_shapes=[pltpu.VMEM((N * THo * w8, TN), jnp.float32)],
        compiler_params=_cparams(("parallel", "parallel")),
    )(*operands)


# ----------------------------------------------------------------------------
# Small full-block matmul kernel: bf16 MXU, f32 accumulate, fused affine/act,
# bf16 out.  Used for strided-conv im2col, 1x1 convs, GAP heads and resizes.
# ----------------------------------------------------------------------------

def _mm_kernel(*refs, act, has_affine):
    if has_affine:
        a_ref, b_ref, s_ref, t_ref, o_ref = refs
    else:
        a_ref, b_ref, o_ref = refs
        s_ref = t_ref = None
    y = jnp.dot(a_ref[...], b_ref[...], preferred_element_type=jnp.float32)
    if has_affine:
        y = y * s_ref[...] + t_ref[...]
    if act == "relu":
        y = jnp.maximum(y, 0.0)
    elif act == "sigmoid":
        y = jax.nn.sigmoid(y)
    o_ref[...] = y.astype(o_ref.dtype)


@functools.partial(jax.jit, static_argnames=("act", "out_dtype"))
def small_matmul(a, b, scale=None, bias=None, *, act="none",
                 out_dtype=jnp.bfloat16):
    M, K = a.shape
    Nc = b.shape[1]
    a = a.astype(jnp.bfloat16)
    b = b.astype(jnp.bfloat16)
    if K % 8:                                   # tiny safety pad (no 128 pad)
        kp = _round_up(K, 8) - K
        a = jnp.pad(a, ((0, 0), (0, kp)))
        b = jnp.pad(b, ((0, kp), (0, 0)))
    has_affine = scale is not None
    operands = [a, b] + ([scale, bias] if has_affine else [])
    return pl.pallas_call(
        functools.partial(_mm_kernel, act=act, has_affine=has_affine),
        out_shape=jax.ShapeDtypeStruct((M, Nc), out_dtype),
        compiler_params=_cparams(),
    )(*operands)


# ----------------------------------------------------------------------------
# Strided convs (stem / stage entry / FPA down path): wrapper im2col + matmul.
# Outputs are spatially decimated so the patch blowup stays small.
# ----------------------------------------------------------------------------

@functools.partial(jax.jit,
                   static_argnames=("kh", "kw", "stride", "dil", "pad", "act"))
def conv_strided(x, w, scale, bias, *, kh, kw, stride, dil=1, pad=0,
                 act="none"):
    N, H, W, Cin = x.shape
    Cout = w.shape[-1]
    Ho = (H + 2 * pad - dil * (kh - 1) - 1) // stride + 1
    Wo = (W + 2 * pad - dil * (kw - 1) - 1) // stride + 1
    xb = x.astype(jnp.bfloat16)
    if pad:
        xb = jnp.pad(xb, ((0, 0), (pad, pad), (pad, pad), (0, 0)))
    cols = []
    for i in range(kh):
        for j in range(kw):
            h0, w0 = i * dil, j * dil
            cols.append(xb[:, h0:h0 + (Ho - 1) * stride + 1:stride,
                            w0:w0 + (Wo - 1) * stride + 1:stride, :])
    patches = jnp.concatenate(cols, axis=-1).reshape(N * Ho * Wo,
                                                     kh * kw * Cin)
    out = small_matmul(patches, w.reshape(kh * kw * Cin, Cout), scale, bias,
                       act=act)
    return out.reshape(N, Ho, Wo, Cout)


def conv2d(x, p, *, stride=1, dil=1, pad=0, act="none", residual=None):
    w, scale, bias = p["w"], p["scale"], p["bias"]
    kh, kw = p["kh"], p["kw"]
    if stride == 1 and (kh > 1 or kw > 1):
        return conv_s1(x, w, scale, bias, residual, kh=kh, kw=kw, dil=dil,
                       pad=pad, act=act)
    assert residual is None
    if stride == 1:                              # 1x1 stride-1 -> pure matmul
        N, H, W, Cin = x.shape
        out = small_matmul(x.reshape(N * H * W, Cin), w.reshape(Cin, -1),
                           scale, bias, act=act)
        return out.reshape(N, H, W, -1)
    return conv_strided(x, w, scale, bias, kh=kh, kw=kw, stride=stride,
                        dil=dil, pad=pad, act=act)


# ----------------------------------------------------------------------------
# Elementwise merges (in-kernel broadcasting; no materialized broadcast_to),
# 2x2 max pool (single bf16 input stream) and global average pool.
# ----------------------------------------------------------------------------

def _make_ew_kernel(op, n_in):
    def kernel(*refs):
        refs[-1][...] = op(*(r[...] for r in refs[:n_in])).astype(
            refs[-1].dtype)
    return kernel


@functools.partial(jax.jit, static_argnums=(0, 1))
def elementwise(op, out_dtype, *arrays):
    shape = jnp.broadcast_shapes(*(a.shape for a in arrays))
    return pl.pallas_call(
        _make_ew_kernel(op, len(arrays)),
        out_shape=jax.ShapeDtypeStruct(shape, out_dtype),
        compiler_params=_cparams(),
    )(*arrays)


def _op_affine(x, s, t):
    return x * s + t


def _op_add(a, b):
    return a + b


def _op_fma(a, b, c):
    return a * b + c


def _op_fma_relu(a, b, c):
    return jnp.maximum(a * b + c, 0.0)


def _maxpool_kernel(x_ref, o_ref):
    c = o_ref.shape[-1]
    m = jnp.maximum(x_ref[:, 0], x_ref[:, 1])            # (R, Wh, 2C)
    o_ref[...] = jnp.maximum(m[..., :c], m[..., c:]).astype(o_ref.dtype)


@jax.jit
def max_pool2x2(x):
    """2x2 / stride-2 max pool (matches the spec's F.max_pool2d(2, 2))."""
    N, H, W, C = x.shape
    assert H % 2 == 0 and W % 2 == 0, (H, W)
    Hh, Wh = H // 2, W // 2
    # (N,H,W,C) -> (N*Hh, 2, Wh, 2C): H-parity in dim 1, W-parity in lanes.
    x4 = x.astype(jnp.bfloat16).reshape(N * Hh, 2, Wh, 2 * C)
    out = pl.pallas_call(
        _maxpool_kernel,
        out_shape=jax.ShapeDtypeStruct((N * Hh, Wh, C), jnp.bfloat16),
        compiler_params=_cparams(),
    )(x4)
    return out.reshape(N, Hh, Wh, C)


def _gap_kernel(x_ref, o_ref):
    o_ref[...] = jnp.mean(x_ref[...].astype(jnp.float32), axis=1)


@jax.jit
def global_avg_pool(x):
    N, H, W, C = x.shape
    return pl.pallas_call(
        _gap_kernel,
        out_shape=jax.ShapeDtypeStruct((N, C), jnp.float32),
        compiler_params=_cparams(),
    )(x.reshape(N, H * W, C))


# ----------------------------------------------------------------------------
# Bilinear resize (align_corners=True) as two small full-block Pallas matmuls.
# ----------------------------------------------------------------------------

def _interp_matrix(out_size, in_size):
    if out_size == 1:
        m = np.zeros((1, in_size), np.float32)
        m[0, 0] = 1.0
        return jnp.asarray(m)
    src = np.arange(out_size, dtype=np.float64) * (in_size - 1) / (out_size - 1)
    i0 = np.minimum(np.floor(src).astype(np.int64), in_size - 1)
    i1 = np.minimum(i0 + 1, in_size - 1)
    frac = (src - i0).astype(np.float32)
    m = np.zeros((out_size, in_size), np.float32)
    m[np.arange(out_size), i0] += 1.0 - frac
    m[np.arange(out_size), i1] += frac
    return jnp.asarray(m)


@functools.partial(jax.jit, static_argnames=("Ho", "Wo"))
def resize_bilinear(x, *, Ho, Wo):
    N, h, w, C = x.shape
    if (h, w) == (Ho, Wo):
        return x
    Ah = _interp_matrix(Ho, h)
    Aw = _interp_matrix(Wo, w)
    t = x.transpose(1, 0, 2, 3).reshape(h, N * w * C)
    r1 = small_matmul(Ah, t).reshape(Ho, N, w, C)
    t2 = r1.transpose(2, 0, 1, 3).reshape(w, Ho * N * C)
    r2 = small_matmul(Aw, t2).reshape(Wo, Ho, N, C)
    return r2.transpose(2, 1, 0, 3)


# ----------------------------------------------------------------------------
# Parameter construction (deterministic, synthetic; weights pre-reshaped bf16)
# ----------------------------------------------------------------------------

class KeyGen:
    def __init__(self, seed):
        self.key = jax.random.PRNGKey(seed)
        self.i = 0

    def __call__(self):
        self.i += 1
        return jax.random.fold_in(self.key, self.i)


def conv_bn_params(kg, kh, kw, cin, cout, eps=1e-5):
    fan_in = kh * kw * cin
    w = jax.random.normal(kg(), (kh, kw, cin, cout), jnp.float32) * (2.0 / fan_in) ** 0.5
    gamma = 1.0 + 0.05 * jax.random.normal(kg(), (cout,), jnp.float32)
    beta = 0.05 * jax.random.normal(kg(), (cout,), jnp.float32)
    rmean = 0.05 * jax.random.normal(kg(), (cout,), jnp.float32)
    rvar = 1.0 + 0.05 * jax.random.uniform(kg(), (cout,), jnp.float32)
    scale = gamma / jnp.sqrt(rvar + eps)
    bias = beta - rmean * scale
    return {"w": w.reshape(kh * kw, cin, cout).astype(jnp.bfloat16),
            "scale": scale.reshape(1, cout), "bias": bias.reshape(1, cout),
            "kh": kh, "kw": kw}


def conv_bias_params(kg, kh, kw, cin, cout):
    fan_in = kh * kw * cin
    w = jax.random.normal(kg(), (kh, kw, cin, cout), jnp.float32) * (2.0 / fan_in) ** 0.5
    b = 0.05 * jax.random.normal(kg(), (cout,), jnp.float32)
    return {"w": w.reshape(kh * kw, cin, cout).astype(jnp.bfloat16),
            "scale": jnp.ones((1, cout), jnp.float32),
            "bias": b.reshape(1, cout), "kh": kh, "kw": kw}


def make_basic_block(kg, cin, cout, stride, dilation):
    p = {"conv1": conv_bn_params(kg, 3, 3, cin, cout),
         "conv2": conv_bn_params(kg, 3, 3, cout, cout),
         "stride": stride, "dilation": dilation, "down": None}
    if stride != 1 or cin != cout:
        p["down"] = conv_bn_params(kg, 1, 1, cin, cout)
    return p


def make_fpa_params(kg, c):
    return {"master": conv_bn_params(kg, 1, 1, c, c),
            "gpb": conv_bn_params(kg, 1, 1, c, c),
            "down1": conv_bn_params(kg, 7, 7, c, c),
            "down2": conv_bn_params(kg, 5, 5, c, c),
            "down3": conv_bn_params(kg, 3, 3, c, c),
            "conv1": conv_bn_params(kg, 7, 7, c, c),
            "conv2": conv_bn_params(kg, 5, 5, c, c),
            "conv3": conv_bn_params(kg, 3, 3, c, c)}


def make_gau_params(kg, c_low, c):
    return {"conv_low": conv_bn_params(kg, 3, 3, c_low, c),
            "conv_att": conv_bias_params(kg, 1, 1, c, c)}


def make_params(seed=0):
    kg = KeyGen(seed)
    params = {"stem": conv_bn_params(kg, 7, 7, 3, 64)}

    def layer(cin, cout, n, stride, dilation):
        return [make_basic_block(kg, cin if i == 0 else cout, cout,
                                 stride if i == 0 else 1, dilation)
                for i in range(n)]

    params["layer1"] = layer(64, 64, 3, 1, 1)
    params["layer2"] = layer(64, 128, 4, 2, 1)
    params["layer3"] = layer(128, 256, 6, 2, 1)
    # TODO(synk): dilated_resnet34 source not provided; layer4 assumed to swap
    #             stride-2 for dilation-2 (spatial stays at 1/16).
    params["layer4"] = layer(256, 512, 3, 1, 2)
    params["center"] = conv_bn_params(kg, 3, 3, 512, 64)
    params["fpa"] = make_fpa_params(kg, 64)
    params["dec5"] = make_gau_params(kg, 256, 64)
    params["dec4"] = make_gau_params(kg, 128, 64)
    params["dec3"] = make_gau_params(kg, 64, 64)
    params["logit1"] = conv_bias_params(kg, 3, 3, 64, 64)
    params["logit2"] = conv_bias_params(kg, 1, 1, 64, 1)
    return params


# ----------------------------------------------------------------------------
# Model forward
# ----------------------------------------------------------------------------

def basic_block_forward(x, p):
    s, d = p["stride"], p["dilation"]
    out = conv2d(x, p["conv1"], stride=s, dil=d, pad=d, act="relu")
    if p["down"] is not None:
        sc = conv2d(x, p["down"], stride=s, pad=0, act="none")
    else:
        sc = x
    # residual add + ReLU fused into the second conv's epilogue
    return conv2d(out, p["conv2"], stride=1, dil=d, pad=d, act="relu",
                  residual=sc)


def fpa_forward(x, p):
    # TODO(synk): L.FeaturePyramidAttention source unavailable; std-mode FPA
    #             reconstructed from the PAN paper.
    N, H, W, C = x.shape
    master = conv2d(x, p["master"], pad=0, act="none")
    g = global_avg_pool(x)
    gpb = small_matmul(g, p["gpb"]["w"].reshape(C, C), p["gpb"]["scale"],
                       p["gpb"]["bias"]).reshape(N, 1, 1, C)
    d1 = conv2d(x, p["down1"], stride=2, pad=3, act="relu")
    d2 = conv2d(d1, p["down2"], stride=2, pad=2, act="relu")
    d3 = conv2d(d2, p["down3"], stride=2, pad=1, act="relu")
    u1 = conv2d(d1, p["conv1"], pad=3, act="relu")
    u2 = conv2d(d2, p["conv2"], pad=2, act="relu")
    u3 = conv2d(d3, p["conv3"], pad=1, act="relu")
    m2 = elementwise(_op_add, jnp.bfloat16, u2,
                     resize_bilinear(u3, Ho=u2.shape[1], Wo=u2.shape[2]))
    m1 = elementwise(_op_add, jnp.bfloat16, u1,
                     resize_bilinear(m2, Ho=u1.shape[1], Wo=u1.shape[2]))
    att = resize_bilinear(m1, Ho=H, Wo=W)
    return elementwise(_op_fma_relu, jnp.bfloat16, master, att, gpb)


def gau_forward(high, low, p, up):
    # TODO(synk): L.GlobalAttentionUpsample source unavailable; reconstructed
    #             from the PAN paper.
    N, Hl, Wl, _ = low.shape
    C = high.shape[-1]
    low_f = conv2d(low, p["conv_low"], pad=1, act="relu")
    att = global_avg_pool(high)
    att = small_matmul(att, p["conv_att"]["w"].reshape(C, C),
                       p["conv_att"]["scale"], p["conv_att"]["bias"],
                       act="sigmoid").reshape(N, 1, 1, C)
    if up:
        high = resize_bilinear(high, Ho=Hl, Wo=Wl)
    return elementwise(_op_fma, jnp.bfloat16, low_f, att, high)


_MEAN = np.array([0.485, 0.456, 0.406], np.float32)
_STD = np.array([0.229, 0.224, 0.225], np.float32)


def panet_forward(params, x_nchw):
    """Input x_nchw: (N, 3, H, W) float32 (PyTorch NCHW). Returns [logit] NCHW."""
    x = jnp.transpose(x_nchw, (0, 2, 3, 1)).astype(jnp.float32)     # -> NHWC
    N, H, W, C = x.shape
    # per-channel normalization as a lane-dense (N*H, W*C) row-broadcast affine
    s_row = jnp.asarray(np.tile(1.0 / _STD, W)).reshape(1, W * C)
    t_row = jnp.asarray(np.tile(-_MEAN / _STD, W)).reshape(1, W * C)
    xn = elementwise(_op_affine, jnp.bfloat16,
                     x.reshape(N * H, W * C), s_row, t_row).reshape(N, H, W, C)

    e0 = conv2d(xn, params["stem"], stride=2, pad=3, act="relu")     # H/2
    p = max_pool2x2(e0)                                              # H/4
    e1 = p
    for blk in params["layer1"]:
        e1 = basic_block_forward(e1, blk)                            # H/4, 64
    e2 = e1
    for blk in params["layer2"]:
        e2 = basic_block_forward(e2, blk)                            # H/8, 128
    e3 = e2
    for blk in params["layer3"]:
        e3 = basic_block_forward(e3, blk)                            # H/16, 256
    e4 = e3
    for blk in params["layer4"]:
        e4 = basic_block_forward(e4, blk)                            # H/16, 512

    f = conv2d(e4, params["center"], pad=1, act="relu")              # H/16, 64
    f = fpa_forward(f, params["fpa"])
    d5 = gau_forward(f, e3, params["dec5"], up=False)                # H/16, 64
    d4 = gau_forward(d5, e2, params["dec4"], up=True)                # H/8, 64
    d3 = gau_forward(d4, e1, params["dec3"], up=True)                # H/4, 64

    l = conv2d(d3, params["logit1"], pad=1, act="relu")
    l = conv2d(l, params["logit2"], pad=0, act="none")               # H/4, 1
    l = resize_bilinear(l, Ho=H, Wo=W)                               # H, 1
    return [jnp.transpose(l.astype(jnp.float32), (0, 3, 1, 2))]      # NCHW


if __name__ == "__main__":
    key = jax.random.PRNGKey(0)
    x = jax.random.uniform(key, (2, 3, 64, 64), jnp.float32)
    params = make_params(seed=0)
    out = panet_forward(params, x)
    logit = jax.block_until_ready(out[0])
    assert logit.shape == (2, 1, 64, 64), logit.shape
    assert bool(jnp.all(jnp.isfinite(logit)))
    print("KERNEL_OK")
</pallas_src>

<mosaic_0001>
module attributes {stable_mosaic.version = 11 : i64} {
  func.func @kernel(%arg0: memref<128x192xf32, #tpu.memory_space<vmem>>, %arg1: memref<1x192xf32, #tpu.memory_space<vmem>>, %arg2: memref<1x192xf32, #tpu.memory_space<vmem>>, %arg3: memref<128x192xbf16, #tpu.memory_space<vmem>>) attributes {dimension_semantics = [], scalar_prefetch = 0 : i64, scratch_operands = 0 : i64, tpu.core_type = #tpu.core_type<tc>} {
    %c0 = arith.constant 0 : index
    %c0_0 = arith.constant 0 : index
    %0 = vector.load %arg0[%c0, %c0_0] : memref<128x192xf32, #tpu.memory_space<vmem>>, vector<128x192xf32>
    %c0_1 = arith.constant 0 : index
    %c0_2 = arith.constant 0 : index
    %1 = vector.load %arg1[%c0_1, %c0_2] : memref<1x192xf32, #tpu.memory_space<vmem>>, vector<1x192xf32>
    %c0_3 = arith.constant 0 : index
    %c0_4 = arith.constant 0 : index
    %2 = vector.load %arg2[%c0_3, %c0_4] : memref<1x192xf32, #tpu.memory_space<vmem>>, vector<1x192xf32>
    %3 = vector.broadcast %1 : vector<1x192xf32> to vector<128x192xf32>
    %4 = arith.mulf %0, %3 : vector<128x192xf32>
    %5 = vector.broadcast %2 : vector<1x192xf32> to vector<128x192xf32>
    %6 = arith.addf %4, %5 : vector<128x192xf32>
    %7 = arith.truncf %6 : vector<128x192xf32> to vector<128x192xbf16>
    %c0_5 = arith.constant 0 : index
    %c0_6 = arith.constant 0 : index
    %8 = vector.load %arg3[%c0_5, %c0_6] : memref<128x192xbf16, #tpu.memory_space<vmem>>, vector<128x192xbf16>
    tpu.vector_store %arg3[%c0_5, %c0_6], %7 {strides = array<i32>} : memref<128x192xbf16, #tpu.memory_space<vmem>>, vector<128x192xbf16>,
    return
  }
}

</mosaic_0001>

<bundles_post_ra>
// kernel: elementwise.1
= control target key start
LH: loop header
LB: loop body
LE: loop exit
PB: predicated region body
PF: predicated region fallthrough
CT: control target
= control target key end

     0   :  { %v49_v0 = vlaneseq  ;;  %vm230_vm0 = vcmask 1043456   ;;  %vm231_vm1 = vcmask 523268   ;;  %s565_s1 = inlined_call_operand.vmem [shape: f32[1,192], index: 1, kind: input, shape index: {}]   ;;  %s566_s2 = inlined_call_operand.vmem [shape: f32[1,192], index: 2, kind: input, shape index: {}]   ;;  %s567_s0 = inlined_call_operand.vmem [shape: f32[128,192], index: 0, kind: input, shape index: {}]   ;;  %s568_s3 = inlined_call_operand.vmem [shape: bf16[128,192], index: 3, kind: output, shape index: {}]  }
   0x1   :  { %v46_v2 = vld [vmem:[%s565_s1] sm:$0x3]  ;;  %v15_v5 = vld [vmem:[%s567_s0 + $0x8] sm:$0xff]  ;;  %v16_v8 = vld [vmem:[%s567_s0 + $0x10] sm:$0xff] }
   0x2   :  { %v50_v1 = vshrl.u32 %v49_v0, 7  ;;  %v47_v3 = vld [vmem:[%s566_s2] sm:$0x3]  ;;  %v17_v9 = vld [vmem:[%s567_s0 + $0x18] sm:$0xff]  ;;  %v19_v15 = vld [vmem:[%s567_s0 + $0x28] sm:$0xff] }
   0x3   :  { %v14_v4 = vld [vmem:[%s567_s0] sm:$0xff]  ;;  %v20_v16 = vld [vmem:[%s567_s0 + $0x30] sm:$0xff]  ;;  %v21_v17 = vld [vmem:[%s567_s0 + $0x38] sm:$0xff] }
   0x4   :  { %v51_v6 = vsub.s32 0, %v50_v1  ;;  %v55_v7 = vsub.s32 1, %v50_v1  ;;  %v18_v10 = vld [vmem:[%s567_s0 + $0x20] sm:$0xff]  ;;  %v23_v27 = vld [vmem:[%s567_s0 + $0x48] sm:$0xff]  ;;  %v24_v32 = vld [vmem:[%s567_s0 + $0x50] sm:$0xff] }
   0x5   :  { %v22_v26 = vld [vmem:[%s567_s0 + $0x40] sm:$0xff]  ;;  %v25_v33 = vld [vmem:[%s567_s0 + $0x58] sm:$0xff]  ;;  %vm369_vm2 = vmor %vm231_vm1, %vm230_vm0 }
   0x6   :  { %v326_v11 = vrot.slane %v46_v2, %v51_v6  ;;  %v328_v12 = vrot.slane %v46_v2, %v55_v7  ;;  %v330_v13 = vrot.slane %v47_v3, %v51_v6  ;;  %v332_v14 = vrot.slane %v47_v3, %v55_v7  ;;  %v26_v39 = vld [vmem:[%s567_s0 + $0x60] sm:$0xff]  ;;  %v27_v40 = vld [vmem:[%s567_s0 + $0x68] sm:$0xff]  ;;  %v28_v45 = vld [vmem:[%s567_s0 + $0x70] sm:$0xff] }
   0x7   :  { %v29_v46 = vld [vmem:[%s567_s0 + $0x78] sm:$0xff]  ;;  %v30_v51 = vld [vmem:[%s567_s0 + $0x80] sm:$0xff]  ;;  %v31_v56 = vld [vmem:[%s567_s0 + $0x88] sm:$0xff] }
   0x8   :  { %v59_v18 = vmul.f32 %v326_v11, %v14_v4  ;;  %v60_v19 = vmul.f32 %v328_v12, %v15_v5  ;;  %v61_v20 = vmul.f32 %v326_v11, %v16_v8  ;;  %v62_v21 = vmul.f32 %v328_v12, %v17_v9  ;;  %v32_v61 = vld [vmem:[%s567_s0 + $0x90] sm:$0xff]  ;;  %v33_v62 = vld [vmem:[%s567_s0 + $0x98] sm:$0xff]  ;;  %v34_v3 = vld [vmem:[%s567_s0 + $0xa0] sm:$0xff] }
   0x9   :  { %v63_v22 = vmul.f32 %v326_v11, %v18_v10  ;;  %v64_v23 = vmul.f32 %v328_v12, %v19_v15  ;;  %v65_v24 = vmul.f32 %v326_v11, %v20_v16  ;;  %v66_v25 = vmul.f32 %v328_v12, %v21_v17  ;;  %v35_v4 = vld [vmem:[%s567_s0 + $0xa8] sm:$0xff]  ;;  %v36_v9 = vld [vmem:[%s567_s0 + $0xb0] sm:$0xff]  ;;  %v37_v10 = vld [vmem:[%s567_s0 + $0xb8] sm:$0xff] }
   0xa   :  { %v102_v28 = vadd.f32 %v330_v13, %v59_v18  ;;  %v103_v29 = vadd.f32 %v332_v14, %v60_v19  ;;  %v104_v30 = vadd.f32 %v330_v13, %v61_v20  ;;  %v105_v31 = vadd.f32 %v332_v14, %v62_v21  ;;  %v38_v19 = vld [vmem:[%s567_s0 + $0xc0] sm:$0xff] }
   0xb   :  { %v106_v35 = vadd.f32 %v330_v13, %v63_v22  ;;  %v107_v36 = vadd.f32 %v332_v14, %v64_v23  ;;  %v108_v37 = vadd.f32 %v330_v13, %v65_v24  ;;  %v109_v38 = vadd.f32 %v332_v14, %v66_v25  ;;  %v39_v24 = vld [vmem:[%s567_s0 + $0xc8] sm:$0xff] }
   0xc   :  { %v269_v41 = vpack.c.bf16 %v103_v29, %v102_v28  ;;  %v270_v42 = vpack.c.bf16 %v105_v31, %v104_v30  ;;  %v67_v43 = vmul.f32 %v326_v11, %v22_v26  ;;  %v68_v44 = vmul.f32 %v328_v12, %v23_v27  ;;  %v40_v29 = vld [vmem:[%s567_s0 + $0xd0] sm:$0xff]  ;;  %v41_v30 = vld [vmem:[%s567_s0 + $0xd8] sm:$0xff] }
   0xd   :  { %v271_v47 = vpack.c.bf16 %v107_v36, %v106_v35  ;;  %v272_v48 = vpack.c.bf16 %v109_v38, %v108_v37  ;;  %v69_v49 = vmul.f32 %v326_v11, %v24_v32  ;;  %v70_v50 = vmul.f32 %v328_v12, %v25_v33  ;;  %v42_v36 = vld [vmem:[%s567_s0 + $0xe0] sm:$0xff]  ;;  %v43_v37 = vld [vmem:[%s567_s0 + $0xe8] sm:$0xff] }
   0xe   :  { %233 = vst.msk [vmem:[%s568_s3] sm:$0xff] %vm369_vm2, %v269_v41  ;;  %234 = vst.msk [vmem:[%s568_s3 + $0x8] sm:$0xff] %vm369_vm2, %v270_v42  ;;  %v110_v52 = vadd.f32 %v330_v13, %v67_v43  ;;  %v111_v53 = vadd.f32 %v332_v14, %v68_v44  ;;  %v71_v54 = vmul.f32 %v326_v11, %v26_v39  ;;  %v44_v42 = vld [vmem:[%s567_s0 + $0xf0] sm:$0xff]  ;;  %v45_v43 = vld [vmem:[%s567_s0 + $0xf8] sm:$0xff] }
   0xf   :  { %v72_v55 = vmul.f32 %v328_v12, %v27_v40  ;;  %235 = vst.msk [vmem:[%s568_s3 + $0x10] sm:$0xff] %vm369_vm2, %v271_v47  ;;  %236 = vst.msk [vmem:[%s568_s3 + $0x18] sm:$0xff] %vm369_vm2, %v272_v48  ;;  %v112_v57 = vadd.f32 %v330_v13, %v69_v49  ;;  %v113_v58 = vadd.f32 %v332_v14, %v70_v50 }
  0x10   :  { %v73_v59 = vmul.f32 %v326_v11, %v28_v45  ;;  %v74_v60 = vmul.f32 %v328_v12, %v29_v46  ;;  %v273_v63 = vpack.c.bf16 %v111_v53, %v110_v52  ;;  %v114_v0 = vadd.f32 %v330_v13, %v71_v54 }
  0x11   :  { %v115_v1 = vadd.f32 %v332_v14, %v72_v55  ;;  %v75_v2 = vmul.f32 %v326_v11, %v30_v51  ;;  %v274_v5 = vpack.c.bf16 %v113_v58, %v112_v57  ;;  %v76_v8 = vmul.f32 %v328_v12, %v31_v56 }
  0x12   :  { %v116_v6 = vadd.f32 %v330_v13, %v73_v59  ;;  %v117_v7 = vadd.f32 %v332_v14, %v74_v60  ;;  %237 = vst.msk [vmem:[%s568_s3 + $0x20] sm:$0xff] %vm369_vm2, %v273_v63  ;;  %v77_v17 = vmul.f32 %v326_v11, %v32_v61  ;;  %v78_v18 = vmul.f32 %v328_v12, %v33_v62 }
  0x13   :  { %v275_v15 = vpack.c.bf16 %v115_v1, %v114_v0  ;;  %v118_v16 = vadd.f32 %v330_v13, %v75_v2  ;;  %238 = vst.msk [vmem:[%s568_s3 + $0x28] sm:$0xff] %vm369_vm2, %v274_v5  ;;  %v119_v21 = vadd.f32 %v332_v14, %v76_v8  ;;  %v79_v22 = vmul.f32 %v326_v11, %v34_v3 }
  0x14   :  { %v276_v20 = vpack.c.bf16 %v117_v7, %v116_v6  ;;  %v80_v23 = vmul.f32 %v328_v12, %v35_v4  ;;  %v120_v25 = vadd.f32 %v330_v13, %v77_v17  ;;  %v121_v26 = vadd.f32 %v332_v14, %v78_v18 }
  0x15   :  { %239 = vst.msk [vmem:[%s568_s3 + $0x30] sm:$0xff] %vm369_vm2, %v275_v15  ;;  %v81_v27 = vmul.f32 %v326_v11, %v36_v9  ;;  %v82_v28 = vmul.f32 %v328_v12, %v37_v10  ;;  %v277_v31 = vpack.c.bf16 %v119_v21, %v118_v16  ;;  %v122_v32 = vadd.f32 %v330_v13, %v79_v22 }
  0x16   :  { %240 = vst.msk [vmem:[%s568_s3 + $0x38] sm:$0xff] %vm369_vm2, %v276_v20  ;;  %v123_v33 = vadd.f32 %v332_v14, %v80_v23  ;;  %v83_v35 = vmul.f32 %v326_v11, %v38_v19  ;;  %v278_v38 = vpack.c.bf16 %v121_v26, %v120_v25  ;;  %v84_v41 = vmul.f32 %v328_v12, %v39_v24 }
  0x17   :  { %v124_v39 = vadd.f32 %v330_v13, %v81_v27  ;;  %v125_v40 = vadd.f32 %v332_v14, %v82_v28  ;;  %241 = vst.msk [vmem:[%s568_s3 + $0x40] sm:$0xff] %vm369_vm2, %v277_v31  ;;  %v85_v46 = vmul.f32 %v326_v11, %v40_v29  ;;  %v86_v47 = vmul.f32 %v328_v12, %v41_v30 }
  0x18   :  { %v279_v44 = vpack.c.bf16 %v123_v33, %v122_v32  ;;  %v126_v45 = vadd.f32 %v330_v13, %v83_v35  ;;  %242 = vst.msk [vmem:[%s568_s3 + $0x48] sm:$0xff] %vm369_vm2, %v278_v38  ;;  %v127_v49 = vadd.f32 %v332_v14, %v84_v41  ;;  %v87_v50 = vmul.f32 %v326_v11, %v42_v36 }
  0x19   :  { %v280_v48 = vpack.c.bf16 %v125_v40, %v124_v39  ;;  %v88_v51 = vmul.f32 %v328_v12, %v43_v37  ;;  %v128_v52 = vadd.f32 %v330_v13, %v85_v46  ;;  %v129_v53 = vadd.f32 %v332_v14, %v86_v47 }
  0x1a   :  { %243 = vst.msk [vmem:[%s568_s3 + $0x50] sm:$0xff] %vm369_vm2, %v279_v44  ;;  %v89_v54 = vmul.f32 %v326_v11, %v44_v42  ;;  %v90_v55 = vmul.f32 %v328_v12, %v45_v43  ;;  %v281_v56 = vpack.c.bf16 %v127_v49, %v126_v45  ;;  %v130_v57 = vadd.f32 %v330_v13, %v87_v50 }
  0x1b   :  { %244 = vst.msk [vmem:[%s568_s3 + $0x58] sm:$0xff] %vm369_vm2, %v280_v48  ;;  %v131_v58 = vadd.f32 %v332_v14, %v88_v51  ;;  %v282_v59 = vpack.c.bf16 %v129_v53, %v128_v52 }
  0x1c   :  { %v132_v60 = vadd.f32 %v330_v13, %v89_v54  ;;  %v133_v61 = vadd.f32 %v332_v14, %v90_v55  ;;  %245 = vst.msk [vmem:[%s568_s3 + $0x60] sm:$0xff] %vm369_vm2, %v281_v56 }
  0x1d   :  { %v283_v11 = vpack.c.bf16 %v131_v58, %v130_v57  ;;  %246 = vst.msk [vmem:[%s568_s3 + $0x68] sm:$0xff] %vm369_vm2, %v282_v59 }
  0x1e   :  { %v284_v12 = vpack.c.bf16 %v133_v61, %v132_v60 }
  0x1f   :  { %247 = vst.msk [vmem:[%s568_s3 + $0x70] sm:$0xff] %vm369_vm2, %v283_v11 }
  0x20   :  { %248 = vst.msk [vmem:[%s568_s3 + $0x78] sm:$0xff] %vm369_vm2, %v284_v12 }

</bundles_post_ra>
